<compile_context>
chip_gen: v7x
topology: tpu7x:2x2x1
jax: 0.10.0
libtpu: 0.0.40
codegen_flags: <defaults>
</compile_context>

<pallas_src>
import functools

import jax
import jax.numpy as jnp
from jax.experimental import pallas as pl
from jax.experimental.pallas import tpu as pltpu

LANE = 128   # lane width
SUB = 8      # f32 sublane tile == accumulator block height


def _device_kind() -> str:
    try:
        return jax.devices()[0].device_kind.lower()
    except Exception:
        return ""


def _num_core_splits() -> int:
    # v7x has 2 TensorCores per chip; v5e / v6e have 1 (a core axis there is
    # pure overhead: duplicate init + extra output block + extra coverage).
    return 2 if "v7" in _device_kind() else 1


def _max_tile_rows() -> int:
    # Rows of 128 lanes per grid step.  Multiples of 32, so the block layout
    # is legal for f32 / bf16 / int8 inputs alike.
    kind = _device_kind()
    if "v7" in kind:
        return 4096      # 2 MiB / input / step vs ~3.2 TB/s HBM
    return 2048          # 1 MiB / input / step (v6e ~1.4 TB/s, v5e ~0.8 TB/s)


def _round_up(x: int, m: int) -> int:
    return ((x + m - 1) // m) * m


def _dimension_semantics(splits: int):
    if splits > 1:
        core = getattr(pltpu, "CORE_PARALLEL", None)
        arb = getattr(pltpu, "ARBITRARY", None)
        if core is not None and arb is not None:
            return (core, arb)              # real cross-TensorCore shard (v7x)
        return ("parallel", "arbitrary")    # fallback for older jax
    return ("arbitrary", "arbitrary")


def _mse_sum_kernel(xr_ref, z_ref, acc_ref, *, inner_tiles, tile_rows,
                    rows_valid, apply_mask):
    """Streams sum((x_recon - z)**2) into a resident (8,128) f32 block."""
    c = pl.program_id(0)   # core split (v7x) -- size 1 on v5e/v6e
    i = pl.program_id(1)   # pipelined reduction sweep

    # Zero this core's resident accumulator block at the start of its sweep.
    @pl.when(i == 0)
    def _init():
        acc_ref[...] = jnp.zeros_like(acc_ref)

    d = xr_ref[...].astype(jnp.float32) - z_ref[...].astype(jnp.float32)
    sq = d * d

    if apply_mask:
        # Ragged tail: rows at/after `rows_valid` belong to the partial
        # trailing block (or to a duplicate block produced by the core-split
        # clamp in the index map) and hold unspecified data -- zero them
        # before accumulating.  Cheap VPU/iota work, hidden under HBM stream.
        block_start = (c * inner_tiles + i) * tile_rows
        row_ids = block_start + jax.lax.broadcasted_iota(jnp.int32, sq.shape, 0)
        sq = jnp.where(row_ids < rows_valid, sq, 0.0)

    # Fold sublane groups with pure VPU adds into the resident accumulator;
    # the final cross-lane reduce of one (8,128) block per core is done in
    # the wrapper.
    acc_ref[...] += jnp.sum(sq.reshape(tile_rows // SUB, SUB, LANE), axis=0)


def vae_loss(x_recon, z, mu, logvar, mse_loss, *, kld_rate=1.0):
    """Returns (total_loss scalar, updated mse_loss array)."""
    assert x_recon.shape == z.shape

    n = x_recon.size
    xf = x_recon.reshape(-1)
    zf = z.reshape(-1)

    # Lane-dense (rows, 128) view.  Pad only the sub-128-element flat tail (if
    # any) with zeros on BOTH operands -> contributes exactly 0 to the sum.
    rows = pl.cdiv(n, LANE)
    if rows * LANE != n:
        pad = rows * LANE - n
        xf = jnp.pad(xf, (0, pad))
        zf = jnp.pad(zf, (0, pad))
    xr2d = xf.reshape(rows, LANE)
    z2d = zf.reshape(rows, LANE)

    max_tile = _max_tile_rows()
    if rows <= max_tile:
        # Whole tensor fits in one tile (<= ~1-2 MiB): keep the (8,128) layout
        # by rounding this tiny single-block case up to a multiple of 8 rows.
        # Large tensors never take this branch, so there is no big padding pass.
        tile_rows = _round_up(rows, SUB)
        if tile_rows != rows:
            xr2d = jnp.pad(xr2d, ((0, tile_rows - rows), (0, 0)))
            z2d = jnp.pad(z2d, ((0, tile_rows - rows), (0, 0)))
            rows = tile_rows
        n_blocks = 1
    else:
        tile_rows = max_tile
        n_blocks = pl.cdiv(rows, tile_rows)

    splits = min(_num_core_splits(), n_blocks)
    inner_tiles = pl.cdiv(n_blocks, splits)

    # Ragged coverage handled in-kernel (no padding of the big slab).
    apply_mask = (rows % tile_rows != 0) or (splits * inner_tiles != n_blocks)

    if splits * inner_tiles == n_blocks:
        def recon_index(c, i):
            return (c * inner_tiles + i, 0)
    else:
        def recon_index(c, i):
            # Keep the DMA window in-bounds; the kernel zero-masks the whole
            # contribution of duplicate blocks via their nominal row ids.
            return (jnp.minimum(c * inner_tiles + i, n_blocks - 1), 0)

    recon_spec = pl.BlockSpec((tile_rows, LANE), recon_index)
    part_spec = pl.BlockSpec((SUB, LANE), lambda c, i: (c, 0))

    itemsize = jnp.dtype(x_recon.dtype).itemsize
    cost = pl.CostEstimate(
        flops=3 * rows * LANE,
        transcendentals=0,
        bytes_accessed=2 * rows * LANE * itemsize + splits * SUB * LANE * 4,
    )

    kernel = functools.partial(
        _mse_sum_kernel, inner_tiles=inner_tiles, tile_rows=tile_rows,
        rows_valid=rows, apply_mask=apply_mask)

    mse_parts = pl.pallas_call(
        kernel,
        grid=(splits, inner_tiles),
        out_shape=jax.ShapeDtypeStruct((splits * SUB, LANE), jnp.float32),
        in_specs=[recon_spec, recon_spec],
        out_specs=part_spec,
        compiler_params=pltpu.CompilerParams(
            dimension_semantics=_dimension_semantics(splits),
            vmem_limit_bytes=32 * 1024 * 1024,
        ),
        cost_estimate=cost,
    )(xr2d, z2d)

    # Tiny epilogue in plain JAX: cross-lane reduce of the per-core (8,128)
    # partials plus the (B, latent) KLD term (fused into the scalar combine).
    loss_mse = jnp.sum(mse_parts)
    lv = logvar.astype(jnp.float32)
    mu_f = mu.astype(jnp.float32)
    loss_kld = -0.5 * jnp.sum(1.0 + lv - mu_f * mu_f - jnp.exp(lv))
    total_loss = loss_mse + kld_rate * loss_kld
    mse_out = mse_loss.at[0].add(loss_mse)   # emulates `mse_loss[0] += loss_MSE`
    return total_loss, mse_out


def _reference(x_recon, z, mu, logvar, mse_loss, kld_rate):
    loss_mse = jnp.sum((x_recon - z) ** 2)
    loss_kld = -0.5 * jnp.sum(1.0 + logvar - mu ** 2 - jnp.exp(logvar))
    return loss_mse + kld_rate * loss_kld, mse_loss.at[0].add(loss_mse)


def _check(x_recon, z, mu, logvar, mse_running, kld_rate, rtol, atol):
    total, mse_updated = vae_loss(x_recon, z, mu, logvar, mse_running,
                                  kld_rate=kld_rate)
    total = jax.block_until_ready(total)
    mse_updated = jax.block_until_ready(mse_updated)
    ref_total, ref_mse = _reference(x_recon, z, mu, logvar, mse_running, kld_rate)
    assert jnp.allclose(total, ref_total, rtol=rtol, atol=atol), (total, ref_total)
    assert jnp.allclose(mse_updated, ref_mse, rtol=rtol, atol=atol), (mse_updated, ref_mse)


if __name__ == "__main__":
    key = jax.random.PRNGKey(0)
    k1, k2, k3, k4, k5, k6 = jax.random.split(key, 6)

    # Primary check: small VAE-like shapes (NCHW recon + (B, latent) stats).
    B, C, H, W = 2, 4, 16, 16
    latent = 32
    x_recon = jax.random.normal(k1, (B, C, H, W), dtype=jnp.float32)
    z_target = jax.random.normal(k2, (B, C, H, W), dtype=jnp.float32)
    mu = jax.random.normal(k3, (B, latent), dtype=jnp.float32)
    logvar = 0.1 * jax.random.normal(k4, (B, latent), dtype=jnp.float32)
    mse_running = jnp.zeros((1,), dtype=jnp.float32)
    _check(x_recon, z_target, mu, logvar, mse_running, 0.5, rtol=1e-5, atol=1e-4)

    # Secondary check: multi-block sweep with a ragged trailing block, which
    # exercises the in-kernel masking path that replaced the wrapper padding.
    xr_big = jax.random.normal(k5, (8, 513, 128), dtype=jnp.float32)
    z_big = jax.random.normal(k6, (8, 513, 128), dtype=jnp.float32)
    _check(xr_big, z_big, mu, logvar, mse_running, 0.25, rtol=1e-4, atol=1e-2)

    print("KERNEL_OK")
</pallas_src>

<mosaic_0001>
module attributes {stable_mosaic.version = 11 : i64} {
  func.func @_mse_sum_kernel(%arg0: i32, %arg1: i32, %arg2: memref<16x128xf32, #tpu.memory_space<vmem>>, %arg3: memref<16x128xf32, #tpu.memory_space<vmem>>, %arg4: memref<8x128xf32, #tpu.memory_space<vmem>>) attributes {dimension_semantics = [#tpu.dimension_semantics<arbitrary>, #tpu.dimension_semantics<arbitrary>], iteration_bounds = array<i64: 1, 1>, scalar_prefetch = 0 : i64, scratch_operands = 0 : i64, tpu.core_type = #tpu.core_type<tc>, window_params = [{transform_indices = @transform_0, window_bounds = array<i64: 16, 128>}, {transform_indices = @transform_1, window_bounds = array<i64: 16, 128>}, {transform_indices = @transform_2, window_bounds = array<i64: 8, 128>}]} {
    %c0_i32 = arith.constant 0 : i32
    %0 = arith.cmpi eq, %arg1, %c0_i32 : i32
    %1 = arith.extui %0 : i1 to i32
    %c0_i32_0 = arith.constant 0 : i32
    %2 = arith.cmpi ne, %1, %c0_i32_0 : i32
    scf.if %2 {
      %cst_8 = arith.constant 0.000000e+00 : f32
      %12 = vector.broadcast %cst_8 : f32 to vector<8x128xf32>
      %c0_9 = arith.constant 0 : index
      %c0_10 = arith.constant 0 : index
      %13 = vector.load %arg4[%c0_9, %c0_10] : memref<8x128xf32, #tpu.memory_space<vmem>>, vector<8x128xf32>
      tpu.vector_store %arg4[%c0_9, %c0_10], %12 {strides = array<i32>} : memref<8x128xf32, #tpu.memory_space<vmem>>, vector<8x128xf32>,
    } else {
    }
    %c0 = arith.constant 0 : index
    %c0_1 = arith.constant 0 : index
    %3 = vector.load %arg2[%c0, %c0_1] : memref<16x128xf32, #tpu.memory_space<vmem>>, vector<16x128xf32>
    %c0_2 = arith.constant 0 : index
    %c0_3 = arith.constant 0 : index
    %4 = vector.load %arg3[%c0_2, %c0_3] : memref<16x128xf32, #tpu.memory_space<vmem>>, vector<16x128xf32>
    %5 = arith.subf %3, %4 : vector<16x128xf32>
    %6 = arith.mulf %5, %5 : vector<16x128xf32>
    %c0_4 = arith.constant 0 : index
    %c0_5 = arith.constant 0 : index
    %7 = vector.load %arg4[%c0_4, %c0_5] : memref<8x128xf32, #tpu.memory_space<vmem>>, vector<8x128xf32>
    %8 = vector.shape_cast %6 : vector<16x128xf32> to vector<2x8x128xf32>
    %cst = arith.constant dense<0.000000e+00> : vector<8x128xf32>
    %9 = vector.multi_reduction <add>, %8, %cst [0] : vector<2x8x128xf32> to vector<8x128xf32>
    %10 = arith.addf %7, %9 : vector<8x128xf32>
    %c0_6 = arith.constant 0 : index
    %c0_7 = arith.constant 0 : index
    %11 = vector.load %arg4[%c0_6, %c0_7] : memref<8x128xf32, #tpu.memory_space<vmem>>, vector<8x128xf32>
    tpu.vector_store %arg4[%c0_6, %c0_7], %10 {strides = array<i32>} : memref<8x128xf32, #tpu.memory_space<vmem>>, vector<8x128xf32>,
    return
  }
  func.func @transform_0(%arg0: i32, %arg1: i32) -> (i32, i32) {
    %c1_i32 = arith.constant 1 : i32
    %0 = arith.muli %arg0, %c1_i32 : i32
    %1 = arith.addi %0, %arg1 : i32
    %c0_i32 = arith.constant 0 : i32
    %c0_i32_0 = arith.constant 0 : i32
    return %1, %c0_i32 : i32, i32
  }
  func.func @transform_1(%arg0: i32, %arg1: i32) -> (i32, i32) {
    %c1_i32 = arith.constant 1 : i32
    %0 = arith.muli %arg0, %c1_i32 : i32
    %1 = arith.addi %0, %arg1 : i32
    %c0_i32 = arith.constant 0 : i32
    %c0_i32_0 = arith.constant 0 : i32
    return %1, %c0_i32 : i32, i32
  }
  func.func @transform_2(%arg0: i32, %arg1: i32) -> (i32, i32) {
    %c0_i32 = arith.constant 0 : i32
    %c0_i32_0 = arith.constant 0 : i32
    return %arg0, %c0_i32 : i32, i32
  }
}

</mosaic_0001>

<bundles_post_ra>
// kernel: tpu_custom_call.1
= control target key start
LH: loop header
LB: loop body
LE: loop exit
PB: predicated region body
PF: predicated region fallthrough
CT: control target
= control target key end

     0   :  { %7 = vsyncpa [#allocation3], 0  ;;  %s219_s0 = inlined_call_operand.hbm [shape: f32[16,128], index: 0, kind: input, shape index: {}]   ;;  %s220_s1 = inlined_call_operand.hbm [shape: f32[16,128], index: 1, kind: input, shape index: {}]   ;;  %s221_s2 = inlined_call_operand.hbm [shape: f32[8,128], index: 2, kind: output, shape index: {}]  }
   0x1   :  { %8 = vsyncpa [#allocation6], 0 }
   0x2   :  { %9 = vsyncpa [#allocation4], 0  ;;  %s163_s9 = smov [#allocation2]   ;;  %s91_s13 = scalar_lea.hbm %s219_s0, 256 }
   0x3   :  { %s19_s10 = sshll.u32 %s163_s9, 4  ;;  %p92_p0 = scmp.ne.s32.totalorder %s219_s0, %s91_s13  ;;  %s20_s10 = int_to_ptr.vmem [resolvable:$true] %s19_s10 }
   0x4   :  { %p95_p1 = scmp.lt.u32.totalorder %s91_s13, %s219_s0 }
   0x6   :  { %p97_p2 = pnand %p95_p1, %p92_p0 }
   0x8   :  { %100 = shalt.err (!%p97_p2)
}
   0x9   :  { %s101_s18 = scalar_lea.vmem %s20_s10, 256  ;;  %p106_p4 = scmp.lt.s32.totalorder %s20_s10, %s20_s10 }
   0xa   :  { %p102_p3 = scmp.ne.s32.totalorder %s20_s10, %s101_s18  ;;  %p107_p5 = scmp.lt.s32.totalorder %s101_s18, %s101_s18 }
   0xc   :  { %p108_p6 = por %p107_p5, %p106_p4 }
   0xe   :  { %p109_p7 = pnand %p108_p6, %p102_p3 }
  0x10   :  { %112 = shalt.err (!%p109_p7)
}
  0x11   :  { %s164_s19 = smov 128   ;;  %s165_s20 = smov 8  }
  0x12   :  { %25 = dma.hbm_to_vmem [thread:$0]  %s219_s0, 256, %s20_s10, [#allocation3], %s164_s19, %s164_s19, %s165_s20  }
  0x13   :  { %s166_s23 = smov [#allocation5]   ;;  %s113_s27 = scalar_lea.hbm %s220_s1, 256 }
  0x14   :  { %s35_s24 = sshll.u32 %s166_s23, 4  ;;  %p114_p8 = scmp.ne.s32.totalorder %s220_s1, %s113_s27  ;;  %s36_s24 = int_to_ptr.vmem [resolvable:$true] %s35_s24 }
  0x15   :  { %p117_p9 = scmp.lt.u32.totalorder %s113_s27, %s220_s1 }
  0x17   :  { %p119_p10 = pnand %p117_p9, %p114_p8 }
  0x19   :  { %122 = shalt.err (!%p119_p10)
}
  0x1a   :  { %s123_s4 = scalar_lea.vmem %s36_s24, 256  ;;  %p128_p12 = scmp.lt.s32.totalorder %s36_s24, %s36_s24 }
  0x1b   :  { %p124_p11 = scmp.ne.s32.totalorder %s36_s24, %s123_s4  ;;  %p129_p13 = scmp.lt.s32.totalorder %s123_s4, %s123_s4 }
  0x1d   :  { %p130_p0 = por %p129_p13, %p128_p12 }
  0x1f   :  { %p131_p1 = pnand %p130_p0, %p124_p11 }
  0x21   :  { %134 = shalt.err (!%p131_p1)
}
  0x22   :  { %41 = dma.hbm_to_vmem [thread:$0]  %s220_s1, 256, %s36_s24, [#allocation6], %s164_s19, %s164_s19, %s165_s20  }
  0x23   :  { %157 = dma.done.wait [#allocation3], 256  }
  0x24   :  { %158 = vsyncadd [#allocation3], 4294967040 }
  0x25   :  { %159 = dma.done.wait [#allocation6], 256  }
  0x26   :  { %160 = vsyncadd [#allocation6], 4294967040  ;;  %v57_v0 = vld [vmem:[#allocation2] sm:$0xff]  ;;  %v58_v1 = vld [vmem:[#allocation2 + $0x8] sm:$0xff]  ;;  %s167_s6 = smov [#allocation7]  }
  0x27   :  { %v59_v2 = vld [vmem:[#allocation5] sm:$0xff]  ;;  %v60_v3 = vld [vmem:[#allocation5 + $0x8] sm:$0xff]  ;;  %s75_s7 = sshll.u32 %s167_s6, 4  ;;  %s76_s7 = int_to_ptr.vmem [resolvable:$true] %s75_s7 }
  0x28   :  { %v61_v4 = vsub.f32 %v57_v0, %v59_v2  ;;  %v62_v5 = vsub.f32 %v58_v1, %v60_v3  ;;  %s135_s8 = scalar_lea.vmem %s76_s7, 128  ;;  %p140_p3 = scmp.lt.s32.totalorder %s76_s7, %s76_s7 }
  0x29   :  { %p136_p2 = scmp.ne.s32.totalorder %s76_s7, %s135_s8  ;;  %p141_p4 = scmp.lt.s32.totalorder %s135_s8, %s135_s8 }
  0x2a   :  { %v63_v6 = vmul.f32 %v61_v4, %v61_v4  ;;  %v64_v7 = vmul.f32 %v62_v5, %v62_v5 }
  0x2b   :  { %p142_p5 = por %p141_p4, %p140_p3 }
  0x2c   :  { %v66_v8 = vadd.f32 %v64_v7, %v63_v6 }
  0x2d   :  { %p143_p6 = pnand %p142_p5, %p136_p2 }
  0x2e   :  { %68 = vst [vmem:[#allocation7] sm:$0xff] %v66_v8 }
  0x2f   :  { %146 = shalt.err (!%p143_p6)
}
  0x30   :  { %s147_s10 = scalar_lea.hbm %s221_s2, 128 }
  0x31   :  { %p148_p7 = scmp.ne.s32.totalorder %s221_s2, %s147_s10  ;;  %p151_p8 = scmp.lt.u32.totalorder %s147_s10, %s221_s2 }
  0x33   :  { %p153_p9 = pnand %p151_p8, %p148_p7 }
  0x35   :  { %156 = shalt.err (!%p153_p9)
}
  0x36   :  { %78 = dma.vmem_to_hbm [thread:$0]  %s76_s7, 128, %s221_s2, [#allocation4]  }
  0x37   :  { %161 = dma.done.wait [#allocation4], 128  }
  0x38   :  { %162 = vsyncadd [#allocation4], 4294967168 }
  0x39   :  { %82 = vsyncpa [#allocation3], 1 }
  0x3a   :  { %83 = vsyncpa [#allocation6], 1 }
  0x3b   :  { %84 = vsyncpa [#allocation4], 1 }

</bundles_post_ra>
